<compile_context>
chip_gen: v7x
topology: tpu7x:2x2x1
jax: 0.10.0
libtpu: 0.0.40
codegen_flags: <defaults>
</compile_context>

<pallas_src>
import math

import jax
import jax.numpy as jnp
from jax.experimental import pallas as pl

# ----------------------------- config (small, consistent with module) -------
B = 2          # batch
S = 8          # seq length
D = 32         # dim
FFN_D = 64     # ffn_dim
H = 4          # num_heads
HD = D // H    # head_dim
BS = B * S
BHS = B * H * S
LN_EPS = 1e-5  # torch.nn.LayerNorm default


# ----------------------------- Pallas kernel --------------------------------
def encoder_layer_kernel(x_ref, x_rep_ref, bias_ref, hmask_ref, gt_ref,
                         wqkv_ref, bqkv_ref,
                         w1_ref, b1_ref, w2_ref, b2_ref,
                         gamma_ref, beta_ref,
                         o_ref):
    # x_ref:     [B*S, D]        original (residual path)
    # x_rep_ref: [B*H*S, D]      head-major row-replicated input: row (b*H+h)*S+s = x[b,s]
    # bias_ref:  [B*H*S, B*H*S]  additive bias: 0 inside own (b,h) block & valid key, -1e30 elsewhere
    # hmask_ref: [B*H*S, D]      1 on own head's HD feature columns, 0 elsewhere
    # gt_ref:    [B*S, B*H*S]    0/1 matrix that sums the H head rows back to [B*S, D]
    x = x_ref[...]
    hmask = hmask_ref[...]

    # --- fused QKV projection over the head-major replicated rows (one MXU push) ---
    qkv = jnp.dot(x_rep_ref[...], wqkv_ref[...],
                  preferred_element_type=jnp.float32) + bqkv_ref[...]       # [BHS, 3D]
    q = qkv[:, 0:D] * hmask        # keep only own-head columns; 1/sqrt(D) already folded into wqkv
    k = qkv[:, D:2 * D]
    v = qkv[:, 2 * D:3 * D]

    # --- block-diagonal all-head scores: contract last dims, no transpose ---
    s = jax.lax.dot_general(q, k, (((1,), (1,)), ((), ())),
                            preferred_element_type=jnp.float32) + bias_ref[...]   # [BHS, BHS]
    m = jnp.max(s, axis=-1, keepdims=True)
    e = jnp.exp(s - m)                    # off-block / masked entries underflow to exactly 0
    p = e / jnp.sum(e, axis=-1, keepdims=True)   # exact divide (restores 1e-4 accuracy)

    # --- PV matmul for all heads at once, then recombine heads via one 0/1 matmul ---
    o_hm = jnp.dot(p, v, preferred_element_type=jnp.float32) * hmask        # [BHS, D]
    attn = jnp.dot(gt_ref[...], o_hm, preferred_element_type=jnp.float32)   # [BS, D]

    # --- FFN applied to the attention output (as in the torch forward) ---
    hdn = jnp.dot(attn, w1_ref[...], preferred_element_type=jnp.float32) + b1_ref[...]
    hdn = jnp.maximum(hdn, 0.0)
    ffn = jnp.dot(hdn, w2_ref[...], preferred_element_type=jnp.float32) + b2_ref[...]

    # --- residuals + final LayerNorm (ffn_norm) ---
    pre = x + attn + ffn
    mu = jnp.mean(pre, axis=-1, keepdims=True)
    var = jnp.mean((pre - mu) ** 2, axis=-1, keepdims=True)
    normed = (pre - mu) * jax.lax.rsqrt(var + LN_EPS)
    o_ref[...] = (normed * gamma_ref[...] + beta_ref[...]).astype(o_ref.dtype)


# ----------------------------- wrapper ---------------------------------------
def encoder_layer(x, seq_mask, params):
    """x: [B, S, D] f32, seq_mask: [B, S] f32 (0 = masked key)."""
    x_flat = x.reshape(BS, D)
    # Head-major row replication: row (b*H + h)*S + s = x[b, s].
    x_rep = jnp.repeat(x, H, axis=0).reshape(BHS, D)

    # Fold the 1/sqrt(dim) score scale into the Q projection (weights AND bias).
    scale = jnp.float32(1.0 / math.sqrt(D))
    wqkv = jnp.concatenate([params["wq"] * scale, params["wk"], params["wv"]], axis=1)  # [D, 3D]
    bqkv = jnp.concatenate([params["bq"] * scale, params["bk"], params["bv"]], axis=1)  # [1, 3D]

    # Block-diagonal + key-mask additive bias over head-major rows/cols.
    # -1e30 (not -inf) so fully-masked rows stay finite; differs from torch only where torch
    # would produce NaN.
    blk = jnp.arange(BHS, dtype=jnp.int32) // S                       # (b,h) block id per row
    same_block = blk[:, None] == blk[None, :]
    key_valid = (jnp.repeat(seq_mask, H, axis=0).reshape(BHS) != 0.0)  # col (b,h,s') -> mask[b,s']
    bias_bd = jnp.where(same_block & key_valid[None, :],
                        jnp.float32(0.0), jnp.float32(-1e30))          # [BHS, BHS]

    # Per-row head mask over feature columns (keep only own head's HD columns).
    row_h = (jnp.arange(BHS, dtype=jnp.int32) // S) % H
    col_h = jnp.arange(D, dtype=jnp.int32) // HD
    hmask = (row_h[:, None] == col_h[None, :]).astype(jnp.float32)     # [BHS, D]

    # Head recombination: attn[(b,s), :] = sum_h o_hm[(b,h,s), :].
    rb = jnp.arange(BS, dtype=jnp.int32) // S
    rs = jnp.arange(BS, dtype=jnp.int32) % S
    cb = jnp.arange(BHS, dtype=jnp.int32) // (H * S)
    cs = jnp.arange(BHS, dtype=jnp.int32) % S
    gt = ((rb[:, None] == cb[None, :]) & (rs[:, None] == cs[None, :])).astype(jnp.float32)  # [BS, BHS]

    flops = 2 * (BHS * D * 3 * D      # qkv
                 + BHS * D * BHS      # scores
                 + BHS * BHS * D      # pv
                 + BS * BHS * D       # head recombination
                 + BS * D * FFN_D     # ffn layer1
                 + BS * FFN_D * D)    # ffn layer2
    operands = (x_flat, x_rep, bias_bd, hmask, gt, wqkv, bqkv,
                params["w1"], params["b1"], params["w2"], params["b2"],
                params["gamma"], params["beta"])
    bytes_accessed = sum(a.size * a.dtype.itemsize for a in operands) + BS * D * 4
    cost = pl.CostEstimate(flops=flops, transcendentals=BHS * BHS + BS,
                           bytes_accessed=bytes_accessed)

    out_flat = pl.pallas_call(
        encoder_layer_kernel,
        out_shape=jax.ShapeDtypeStruct((BS, D), jnp.float32),
        # No grid: the whole (tiny) problem fits one invocation; all operands resident in VMEM.
        cost_estimate=cost,
    )(*operands)

    return out_flat.reshape(B, S, D)


# ----------------------------- pure-JAX reference ----------------------------
def encoder_layer_ref(x, seq_mask, p):
    q = x @ p["wq"] + p["bq"][0]
    k = x @ p["wk"] + p["bk"][0]
    v = x @ p["wv"] + p["bv"][0]
    qh = q.reshape(B, S, H, HD).transpose(0, 2, 1, 3)
    kh = k.reshape(B, S, H, HD).transpose(0, 2, 1, 3)
    vh = v.reshape(B, S, H, HD).transpose(0, 2, 1, 3)
    s = jnp.einsum("bhqd,bhkd->bhqk", qh, kh) / math.sqrt(D)
    mask = seq_mask[:, None, None, :]
    s = jnp.where(mask == 0.0, -jnp.inf, s)
    alpha = jax.nn.softmax(s, axis=-1)
    attn = jnp.einsum("bhqk,bhkd->bhqd", alpha, vh).transpose(0, 2, 1, 3).reshape(B, S, D)
    ffn = jnp.maximum(attn @ p["w1"] + p["b1"][0], 0.0) @ p["w2"] + p["b2"][0]
    pre = x + attn + ffn
    mu = pre.mean(-1, keepdims=True)
    var = ((pre - mu) ** 2).mean(-1, keepdims=True)
    return (pre - mu) / jnp.sqrt(var + LN_EPS) * p["gamma"][0] + p["beta"][0]


# ----------------------------- main -------------------------------------------
if __name__ == "__main__":
    key = jax.random.PRNGKey(0)
    ks = jax.random.split(key, 12)

    def lin(k, fan_in, fan_out):
        return jax.random.normal(k, (fan_in, fan_out), jnp.float32) / math.sqrt(fan_in)

    params = {
        "wq": lin(ks[0], D, D), "bq": jax.random.normal(ks[1], (1, D), jnp.float32) * 0.01,
        "wk": lin(ks[2], D, D), "bk": jax.random.normal(ks[3], (1, D), jnp.float32) * 0.01,
        "wv": lin(ks[4], D, D), "bv": jax.random.normal(ks[5], (1, D), jnp.float32) * 0.01,
        "w1": lin(ks[6], D, FFN_D), "b1": jax.random.normal(ks[7], (1, FFN_D), jnp.float32) * 0.01,
        "w2": lin(ks[8], FFN_D, D), "b2": jax.random.normal(ks[9], (1, D), jnp.float32) * 0.01,
        "gamma": jnp.ones((1, D), jnp.float32),
        "beta": jnp.zeros((1, D), jnp.float32),
    }

    x = jax.random.normal(ks[10], (B, S, D), jnp.float32)
    # seq_mask: 1 = valid key, 0 = masked key (mask out the last two keys of batch 1)
    seq_mask = jnp.ones((B, S), jnp.float32).at[1, S - 2:].set(0.0)

    out = encoder_layer(x, seq_mask, params)
    out = jax.block_until_ready(out)

    ref = encoder_layer_ref(x, seq_mask, params)
    assert out.shape == (B, S, D)
    assert jnp.allclose(out, ref, atol=1e-4, rtol=1e-4), "mismatch vs pure-JAX reference"

    # TODO(synk): entmax_bisect branch (sparse=True) has no Pallas equivalent here; sparse=False path implemented.
    print("KERNEL_OK")
</pallas_src>

<mosaic_0001>
module attributes {stable_mosaic.version = 11 : i64} {
  func.func @encoder_layer_kernel(%arg0: memref<16x32xf32, #tpu.memory_space<vmem>>, %arg1: memref<64x32xf32, #tpu.memory_space<vmem>>, %arg2: memref<64x64xf32, #tpu.memory_space<vmem>>, %arg3: memref<64x32xf32, #tpu.memory_space<vmem>>, %arg4: memref<16x64xf32, #tpu.memory_space<vmem>>, %arg5: memref<32x96xf32, #tpu.memory_space<vmem>>, %arg6: memref<1x96xf32, #tpu.memory_space<vmem>>, %arg7: memref<32x64xf32, #tpu.memory_space<vmem>>, %arg8: memref<1x64xf32, #tpu.memory_space<vmem>>, %arg9: memref<64x32xf32, #tpu.memory_space<vmem>>, %arg10: memref<1x32xf32, #tpu.memory_space<vmem>>, %arg11: memref<1x32xf32, #tpu.memory_space<vmem>>, %arg12: memref<1x32xf32, #tpu.memory_space<vmem>>, %arg13: memref<16x32xf32, #tpu.memory_space<vmem>>) attributes {dimension_semantics = [], scalar_prefetch = 0 : i64, scratch_operands = 0 : i64, tpu.core_type = #tpu.core_type<tc>} {
    %c0 = arith.constant 0 : index
    %c0_0 = arith.constant 0 : index
    %0 = vector.load %arg0[%c0, %c0_0] : memref<16x32xf32, #tpu.memory_space<vmem>>, vector<16x32xf32>
    %c0_1 = arith.constant 0 : index
    %c0_2 = arith.constant 0 : index
    %1 = vector.load %arg3[%c0_1, %c0_2] : memref<64x32xf32, #tpu.memory_space<vmem>>, vector<64x32xf32>
    %c0_3 = arith.constant 0 : index
    %c0_4 = arith.constant 0 : index
    %2 = vector.load %arg1[%c0_3, %c0_4] : memref<64x32xf32, #tpu.memory_space<vmem>>, vector<64x32xf32>
    %c0_5 = arith.constant 0 : index
    %c0_6 = arith.constant 0 : index
    %3 = vector.load %arg5[%c0_5, %c0_6] : memref<32x96xf32, #tpu.memory_space<vmem>>, vector<32x96xf32>
    %cst = arith.constant dense<0.000000e+00> : vector<64x96xf32>
    %4 = tpu.matmul %2, %3, %cst {dimension_numbers = #tpu.dot_dimension_numbers<[1], [0], [0], [1], [0, 0, 1, 1], [], []>} : vector<64x32xf32>, vector<32x96xf32>, vector<64x96xf32> -> vector<64x96xf32>
    %c0_7 = arith.constant 0 : index
    %c0_8 = arith.constant 0 : index
    %5 = vector.load %arg6[%c0_7, %c0_8] : memref<1x96xf32, #tpu.memory_space<vmem>>, vector<1x96xf32>
    %6 = vector.broadcast %5 : vector<1x96xf32> to vector<64x96xf32>
    %7 = arith.addf %4, %6 : vector<64x96xf32>
    %8 = vector.extract_strided_slice %7 {offsets = [0, 0], sizes = [64, 32], strides = [1, 1]} : vector<64x96xf32> to vector<64x32xf32>
    %9 = arith.mulf %8, %1 : vector<64x32xf32>
    %10 = vector.extract_strided_slice %7 {offsets = [0, 32], sizes = [64, 32], strides = [1, 1]} : vector<64x96xf32> to vector<64x32xf32>
    %11 = vector.extract_strided_slice %7 {offsets = [0, 64], sizes = [64, 32], strides = [1, 1]} : vector<64x96xf32> to vector<64x32xf32>
    %cst_9 = arith.constant dense<0.000000e+00> : vector<64x64xf32>
    %12 = tpu.matmul %9, %10, %cst_9 {dimension_numbers = #tpu.dot_dimension_numbers<[1], [1], [0], [0], [0, 0, 1, 0], [], []>} : vector<64x32xf32>, vector<64x32xf32>, vector<64x64xf32> -> vector<64x64xf32>
    %c0_10 = arith.constant 0 : index
    %c0_11 = arith.constant 0 : index
    %13 = vector.load %arg2[%c0_10, %c0_11] : memref<64x64xf32, #tpu.memory_space<vmem>>, vector<64x64xf32>
    %14 = arith.addf %12, %13 : vector<64x64xf32>
    %cst_12 = arith.constant dense<0xFF800000> : vector<64xf32>
    %15 = vector.multi_reduction <maximumf>, %14, %cst_12 [1] : vector<64x64xf32> to vector<64xf32>
    %16 = vector.shape_cast %15 : vector<64xf32> to vector<64x1xf32>
    %17 = vector.broadcast %16 : vector<64x1xf32> to vector<64x64xf32>
    %18 = arith.subf %14, %17 : vector<64x64xf32>
    %19 = math.exp %18 : vector<64x64xf32>
    %cst_13 = arith.constant dense<0.000000e+00> : vector<64xf32>
    %20 = vector.multi_reduction <add>, %19, %cst_13 [1] : vector<64x64xf32> to vector<64xf32>
    %21 = vector.shape_cast %20 : vector<64xf32> to vector<64x1xf32>
    %22 = vector.broadcast %21 : vector<64x1xf32> to vector<64x64xf32>
    %23 = arith.divf %19, %22 : vector<64x64xf32>
    %cst_14 = arith.constant dense<0.000000e+00> : vector<64x32xf32>
    %24 = tpu.matmul %23, %11, %cst_14 {dimension_numbers = #tpu.dot_dimension_numbers<[1], [0], [0], [1], [0, 0, 1, 1], [], []>} : vector<64x64xf32>, vector<64x32xf32>, vector<64x32xf32> -> vector<64x32xf32>
    %25 = arith.mulf %24, %1 : vector<64x32xf32>
    %c0_15 = arith.constant 0 : index
    %c0_16 = arith.constant 0 : index
    %26 = vector.load %arg4[%c0_15, %c0_16] : memref<16x64xf32, #tpu.memory_space<vmem>>, vector<16x64xf32>
    %cst_17 = arith.constant dense<0.000000e+00> : vector<16x32xf32>
    %27 = tpu.matmul %26, %25, %cst_17 {dimension_numbers = #tpu.dot_dimension_numbers<[1], [0], [0], [1], [0, 0, 1, 1], [], []>} : vector<16x64xf32>, vector<64x32xf32>, vector<16x32xf32> -> vector<16x32xf32>
    %c0_18 = arith.constant 0 : index
    %c0_19 = arith.constant 0 : index
    %28 = vector.load %arg7[%c0_18, %c0_19] : memref<32x64xf32, #tpu.memory_space<vmem>>, vector<32x64xf32>
    %cst_20 = arith.constant dense<0.000000e+00> : vector<16x64xf32>
    %29 = tpu.matmul %27, %28, %cst_20 {dimension_numbers = #tpu.dot_dimension_numbers<[1], [0], [0], [1], [0, 0, 1, 1], [], []>} : vector<16x32xf32>, vector<32x64xf32>, vector<16x64xf32> -> vector<16x64xf32>
    %c0_21 = arith.constant 0 : index
    %c0_22 = arith.constant 0 : index
    %30 = vector.load %arg8[%c0_21, %c0_22] : memref<1x64xf32, #tpu.memory_space<vmem>>, vector<1x64xf32>
    %31 = vector.broadcast %30 : vector<1x64xf32> to vector<16x64xf32>
    %32 = arith.addf %29, %31 : vector<16x64xf32>
    %cst_23 = arith.constant 0.000000e+00 : f32
    %33 = vector.broadcast %cst_23 : f32 to vector<16x64xf32>
    %34 = arith.maximumf %32, %33 : vector<16x64xf32>
    %c0_24 = arith.constant 0 : index
    %c0_25 = arith.constant 0 : index
    %35 = vector.load %arg9[%c0_24, %c0_25] : memref<64x32xf32, #tpu.memory_space<vmem>>, vector<64x32xf32>
    %cst_26 = arith.constant dense<0.000000e+00> : vector<16x32xf32>
    %36 = tpu.matmul %34, %35, %cst_26 {dimension_numbers = #tpu.dot_dimension_numbers<[1], [0], [0], [1], [0, 0, 1, 1], [], []>} : vector<16x64xf32>, vector<64x32xf32>, vector<16x32xf32> -> vector<16x32xf32>
    %c0_27 = arith.constant 0 : index
    %c0_28 = arith.constant 0 : index
    %37 = vector.load %arg10[%c0_27, %c0_28] : memref<1x32xf32, #tpu.memory_space<vmem>>, vector<1x32xf32>
    %38 = vector.broadcast %37 : vector<1x32xf32> to vector<16x32xf32>
    %39 = arith.addf %36, %38 : vector<16x32xf32>
    %40 = arith.addf %0, %27 : vector<16x32xf32>
    %41 = arith.addf %40, %39 : vector<16x32xf32>
    %cst_29 = arith.constant dense<0.000000e+00> : vector<16xf32>
    %42 = vector.multi_reduction <add>, %41, %cst_29 [1] : vector<16x32xf32> to vector<16xf32>
    %43 = vector.shape_cast %42 : vector<16xf32> to vector<16x1xf32>
    %cst_30 = arith.constant 3.200000e+01 : f32
    %44 = vector.broadcast %cst_30 : f32 to vector<16x1xf32>
    %45 = arith.divf %43, %44 : vector<16x1xf32>
    %46 = vector.broadcast %45 : vector<16x1xf32> to vector<16x32xf32>
    %47 = arith.subf %41, %46 : vector<16x32xf32>
    %48 = arith.mulf %47, %47 : vector<16x32xf32>
    %cst_31 = arith.constant dense<0.000000e+00> : vector<16xf32>
    %49 = vector.multi_reduction <add>, %48, %cst_31 [1] : vector<16x32xf32> to vector<16xf32>
    %50 = vector.shape_cast %49 : vector<16xf32> to vector<16x1xf32>
    %cst_32 = arith.constant 3.200000e+01 : f32
    %51 = vector.broadcast %cst_32 : f32 to vector<16x1xf32>
    %52 = arith.divf %50, %51 : vector<16x1xf32>
    %53 = vector.broadcast %45 : vector<16x1xf32> to vector<16x32xf32>
    %54 = arith.subf %41, %53 : vector<16x32xf32>
    %cst_33 = arith.constant 9.99999974E-6 : f32
    %55 = vector.broadcast %cst_33 : f32 to vector<16x1xf32>
    %56 = arith.addf %52, %55 : vector<16x1xf32>
    %57 = math.rsqrt %56 : vector<16x1xf32>
    %58 = vector.broadcast %57 : vector<16x1xf32> to vector<16x32xf32>
    %59 = arith.mulf %54, %58 : vector<16x32xf32>
    %c0_34 = arith.constant 0 : index
    %c0_35 = arith.constant 0 : index
    %60 = vector.load %arg11[%c0_34, %c0_35] : memref<1x32xf32, #tpu.memory_space<vmem>>, vector<1x32xf32>
    %61 = vector.broadcast %60 : vector<1x32xf32> to vector<16x32xf32>
    %62 = arith.mulf %59, %61 : vector<16x32xf32>
    %c0_36 = arith.constant 0 : index
    %c0_37 = arith.constant 0 : index
    %63 = vector.load %arg12[%c0_36, %c0_37] : memref<1x32xf32, #tpu.memory_space<vmem>>, vector<1x32xf32>
    %64 = vector.broadcast %63 : vector<1x32xf32> to vector<16x32xf32>
    %65 = arith.addf %62, %64 : vector<16x32xf32>
    %c0_38 = arith.constant 0 : index
    %c0_39 = arith.constant 0 : index
    %66 = vector.load %arg13[%c0_38, %c0_39] : memref<16x32xf32, #tpu.memory_space<vmem>>, vector<16x32xf32>
    tpu.vector_store %arg13[%c0_38, %c0_39], %65 {strides = array<i32>} : memref<16x32xf32, #tpu.memory_space<vmem>>, vector<16x32xf32>,
    return
  }
}

</mosaic_0001>

<bundles_post_ra>
// kernel: tpu_custom_call.1
= control target key start
LH: loop header
LB: loop body
LE: loop exit
PB: predicated region body
PF: predicated region fallthrough
CT: control target
= control target key end

     0   :  { %vm74_vm0 = vcmask 261120   ;;  %s1794_s0 = inlined_call_operand.vmem [shape: f32[16,32], index: 0, kind: input, shape index: {}]   ;;  %s1795_s1 = inlined_call_operand.vmem [shape: f32[64,32], index: 1, kind: input, shape index: {}]   ;;  %s1796_s2 = inlined_call_operand.vmem [shape: f32[64,64], index: 2, kind: input, shape index: {}]   ;;  %s1797_s3 = inlined_call_operand.vmem [shape: f32[64,32], index: 3, kind: input, shape index: {}]   ;;  %s1798_s4 = inlined_call_operand.vmem [shape: f32[16,64], index: 4, kind: input, shape index: {}]   ;;  %s1799_s5 = inlined_call_operand.vmem [shape: f32[32,96], index: 5, kind: input, shape index: {}]   ;;  %s1800_s6 = inlined_call_operand.vmem [shape: f32[1,96], index: 6, kind: input, shape index: {}]   ;;  %s1801_s7 = inlined_call_operand.vmem [shape: f32[32,64], index: 7, kind: input, shape index: {}]   ;;  %s1802_s8 = inlined_call_operand.vmem [shape: f32[1,64], index: 8, kind: input, shape index: {}]   ;;  %s1803_s9 = inlined_call_operand.vmem [shape: f32[64,32], index: 9, kind: input, shape index: {}]   ;;  %s1804_s10 = inlined_call_operand.vmem [shape: f32[1,32], index: 10, kind: input, shape index: {}]   ;;  %s1805_s11 = inlined_call_operand.vmem [shape: f32[1,32], index: 11, kind: input, shape index: {}]   ;;  %s1806_s12 = inlined_call_operand.vmem [shape: f32[1,32], index: 12, kind: input, shape index: {}]   ;;  %s1807_s13 = inlined_call_operand.hbm [shape: f32[16,32], index: 13, kind: output, shape index: {}]  }
   0x1   :  { %v63_v0 = vld [vmem:[%s1799_s5] sm:$0xff]  ;;  %v64_v1 = vld [vmem:[%s1799_s5 + $0x8] sm:$0xff]  ;;  %v65_v2 = vld [vmem:[%s1799_s5 + $0x10] sm:$0xff] }
   0x2   :  { %v1217_v3 = vpack.c.bf16 %v64_v1, %v63_v0  ;;  %v66_v4 = vld [vmem:[%s1799_s5 + $0x18] sm:$0xff]  ;;  %v55_v5 = vld [vmem:[%s1795_s1] sm:$0xff] }
   0x3   :  { %v1221_v6 = vpack.c.bf16 %v66_v4, %v65_v2  ;;  %1100 = vmatprep.mubr.msk.f32.mxu0 %vm74_vm0, %v55_v5 }
   0x4   :  { %1218 = vmatprep.subr.bf16.mxu0 %v1217_v3 }
   0x5   :  { %1220 = vmatpush3.bf16.msra.mxu0 %v1217_v3 }
   0x6   :  { %18 = vsyncpa [#allocation3], 0  ;;  %1222 = vmatprep.subr.bf16.mxu0 %v1221_v6  ;;  %v56_v7 = vld [vmem:[%s1795_s1 + $0x8] sm:$0xff]  ;;  %v57_v8 = vld [vmem:[%s1795_s1 + $0x10] sm:$0xff]  ;;  %vm389_vm2 = vcmask 523264   ;;  %s1411_s25 = smov 64  }
   0x7   :  { %v58_v9 = vld [vmem:[%s1795_s1 + $0x18] sm:$0xff]  ;;  %v59_v10 = vld [vmem:[%s1795_s1 + $0x20] sm:$0xff]  ;;  %v60_v11 = vld [vmem:[%s1795_s1 + $0x28] sm:$0xff] }
   0x8   :  { %v61_v12 = vld [vmem:[%s1795_s1 + $0x30] sm:$0xff]  ;;  %v62_v13 = vld [vmem:[%s1795_s1 + $0x38] sm:$0xff]  ;;  %v979_v14 = vld [vmem:[%s1800_s6] ss:$0 sm:$0xff]  ;;  %s1410_s1 = smov 96   ;;  %s1412_s6 = smov [#allocation2]  }
   0x9   :  { %1224 = vmatpush3.bf16.msra.mxu0 %v1221_v6  ;;  %v1535_v18 = vld [vmem:[%s1797_s3] sm:$0xff]  ;;  %vm1553_vm1 = vmpackc.low %vm74_vm0, %vm74_vm0  ;;  %v1576_v54 = vld [vmem:[%s1797_s3 + $0x8] sm:$0xff]  ;;  %s968_s18 = sshll.u32 %s1412_s6, 4  ;;  %s969_s18 = int_to_ptr.vmem [resolvable:$true] %s968_s18 }
   0xa   :  { %v1581_v55 = vld [vmem:[%s1797_s3 + $0x10] sm:$0xff]  ;;  %v1587_v57 = vld [vmem:[%s1797_s3 + $0x18] sm:$0xff]  ;;  %v1593_v59 = vld [vmem:[%s1797_s3 + $0x20] sm:$0xff]  ;;  %s1386_s19 = scalar_lea.vmem %s969_s18, 256  ;;  %p1391_p1 = scmp.lt.s32.totalorder %s969_s18, %s969_s18 }
   0xb   :  { %v1601_v61 = vld [vmem:[%s1797_s3 + $0x28] sm:$0xff]  ;;  %v1607_v63 = vld [vmem:[%s1797_s3 + $0x30] sm:$0xff]  ;;  %v1615_v1 = vld [vmem:[%s1797_s3 + $0x38] sm:$0xff]  ;;  %p1387_p0 = scmp.ne.s32.totalorder %s969_s18, %s1386_s19  ;;  %p1392_p2 = scmp.lt.s32.totalorder %s1386_s19, %s1386_s19 }
   0xc   :  { %1101 = vmatmul.mubr.msk.f32.vlgmr.msra.gmra.mrb[0].mxu0 %vm74_vm0, %v56_v7  ;;  %v213_v4 = vld [vmem:[%s1796_s2 + $0x8] sm:$0xff]  ;;  %v212_v5 = vld [vmem:[%s1796_s2] sm:$0xff] }
   0xd   :  { %1103 = vmatprep.mubr.msk.f32.mxu0 %vm74_vm0, %v57_v8  ;;  %p1393_p3 = por %p1392_p2, %p1391_p1 }
   0xf   :  { %p1394_p4 = pnand %p1393_p3, %p1387_p0 }
  0x10   :  { %1104 = vmatmul.mubr.msk.f32.gmra.mrb[2].mxu0 %vm74_vm0, %v58_v9 }
  0x11   :  { %1106 = vmatprep.mubr.msk.f32.mxu0 %vm74_vm0, %v59_v10 }
  0x14   :  { %1107 = vmatmul.mubr.msk.f32.gmra.mrb[4].mxu0 %vm74_vm0, %v60_v11  ;;  %v214_v11 = vld [vmem:[%s1796_s2 + $0x10] sm:$0xff] }
  0x15   :  { %1109 = vmatprep.mubr.msk.f32.mxu0 %vm74_vm0, %v61_v12 }
  0x18   :  { %1110 = vmatmul.mubr.msk.f32.gmra.mrb[6].mxu0 %vm74_vm0, %v62_v13 }
  0xdf   :  { %v1102_v15 = vpop.f32.mrb[0].mxu0 }
  0xe0   :  { %v171_v16 = vadd.f32 %v1102_v15, %v979_v14  ;;  %v165_v17 = vpop.f32.mrb[1].mxu0 }
  0xe1   :  { %v166_v19 = vadd.f32 %v979_v14, %v165_v17  ;;  %v216_v17 = vld [vmem:[%s1796_s2 + $0x20] sm:$0xff] }
  0xe2   :  { %v205_v56 = vmul.f32 %v171_v16, %v1576_v54 }
  0xe3   :  { %v1537_v20 = vpack.i.bf16 %v171_v16, %v166_v19  ;;  %v204_v21 = vmul.f32 %v166_v19, %v1535_v18  ;;  %v1105_v22 = vpop.f32.mrb[2].mxu0 }
  0xe4   :  { %v181_v23 = vadd.f32 %v1105_v22, %v979_v14  ;;  %v175_v24 = vpop.f32.mrb[3].mxu0 }
  0xe5   :  { %1311 = vrot.lane.b32.xlu0 %v1537_v20, %s1410_s1  ;;  %1128 = vmatprep.mubr.msk.f32.mxu1 %vm74_vm0, %v204_v21  ;;  %v176_v25 = vadd.f32 %v979_v14, %v175_v24 }
  0xe6   :  { %v207_v60 = vmul.f32 %v181_v23, %v1587_v57 }
  0xe7   :  { %v1542_v26 = vpack.i.bf16 %v181_v23, %v176_v25  ;;  %v1108_v27 = vpop.f32.mrb[4].mxu0  ;;  %v206_v58 = vmul.f32 %v176_v25, %v1581_v55  ;;  %v217_v23 = vld [vmem:[%s1796_s2 + $0x28] sm:$0xff] }
  0xe8   :  { %v191_v28 = vadd.f32 %v1108_v27, %v979_v14  ;;  %v185_v29 = vpop.f32.mrb[5].mxu0  ;;  %v218_v27 = vld [vmem:[%s1796_s2 + $0x30] sm:$0xff] }
  0xe9   :  { %1316 = vrot.lane.b32.xlu0 %v1542_v26, %s1410_s1  ;;  %v186_v30 = vadd.f32 %v979_v14, %v185_v29 }
  0xea   :  { %v209_v0 = vmul.f32 %v191_v28, %v1601_v61 }
  0xeb   :  { %v1545_v31 = vpack.i.bf16 %v191_v28, %v186_v30  ;;  %v1111_v32 = vpop.f32.mrb[6].mxu0  ;;  %v208_v62 = vmul.f32 %v186_v30, %v1593_v59 }
  0xec   :  { %v201_v33 = vadd.f32 %v1111_v32, %v979_v14  ;;  %v195_v34 = vpop.f32.mrb[7].mxu0 }
  0xed   :  { %1321 = vrot.lane.b32.xlu1 %v1545_v31, %s1410_s1  ;;  %v196_v35 = vadd.f32 %v979_v14, %v195_v34  ;;  %v215_v14 = vld [vmem:[%s1796_s2 + $0x18] sm:$0xff] }
  0xee   :  { %v211_v3 = vmul.f32 %v201_v33, %v1615_v1 }
  0xef   :  { %v1548_v36 = vpack.i.bf16 %v201_v33, %v196_v35  ;;  %v210_v2 = vmul.f32 %v196_v35, %v1607_v63  ;;  %v219_v33 = vld [vmem:[%s1796_s2 + $0x38] sm:$0xff] }
  0xf1   :  { %1326 = vrot.lane.b32.xlu1 %v1548_v36, %s1410_s1 }
 0x157   :  { %v1312_v37 = vpop.permute.xlu0 %1311 }
 0x158   :  { %v1314_v38 = vunpack.i.h.bf16 %v1312_v37  ;;  %v1313_v39 = vunpack.i.l.bf16 %v1312_v37 }
 0x15a   :  { %v1225_v41 = vpack.c.bf16 %v1314_v38, %v1313_v39 }
 0x15b   :  { %v1317_v42 = vpop.permute.xlu0 %1316 }
 0x15c   :  { %1227 = vmatprep.subr.msk.bf16.mxu1 %vm1553_vm1, %v1225_v41  ;;  %v1319_v43 = vunpack.i.h.bf16 %v1317_v42  ;;  %v1318_v44 = vunpack.i.l.bf16 %v1317_v42 }
 0x15d   :  { %1230 = vmatpush3.bf16.xpose.msk.msra.mxu1 %vm1553_vm1, %v1225_v41 }
 0x15e   :  { %v1231_v45 = vpack.c.bf16 %v1319_v43, %v1318_v44 }
 0x15f   :  { %v1322_v46 = vpop.permute.xlu1 %1321 }
 0x160   :  { %1233 = vmatprep.subr.msk.bf16.mxu1 %vm1553_vm1, %v1231_v45  ;;  %v1324_v47 = vunpack.i.h.bf16 %v1322_v46  ;;  %v1323_v48 = vunpack.i.l.bf16 %v1322_v46 }
 0x162   :  { %v1237_v49 = vpack.c.bf16 %v1324_v47, %v1323_v48 }
 0x163   :  { %v1327_v50 = vpop.permute.xlu1 %1326 }
 0x164   :  { %v1329_v51 = vunpack.i.h.bf16 %v1327_v50  ;;  %v1328_v52 = vunpack.i.l.bf16 %v1327_v50 }
 0x165   :  { %1236 = vmatpush3.bf16.xpose.msk.msra.mxu1 %vm1553_vm1, %v1231_v45 }
 0x166   :  { %1239 = vmatprep.subr.msk.bf16.mxu1 %vm1553_vm1, %v1237_v49  ;;  %v1243_v53 = vpack.c.bf16 %v1329_v51, %v1328_v52 }
 0x16d   :  { %1242 = vmatpush3.bf16.xpose.msk.msra.mxu1 %vm1553_vm1, %v1237_v49 }
 0x16e   :  { %1245 = vmatprep.subr.msk.bf16.mxu1 %vm1553_vm1, %v1243_v53 }
 0x175   :  { %1248 = vmatpush3.bf16.xpose.msk.msra.mxu1 %vm1553_vm1, %v1243_v53 }
 0x17c   :  { %1129 = vmatmul.mubr.msk.f32.vlgmr.msra.gmra.mrb[0].mxu1 %vm74_vm0, %v205_v56 }
 0x17d   :  { %1131 = vmatprep.mubr.msk.f32.mxu1 %vm74_vm0, %v206_v58 }
 0x180   :  { %1132 = vmatmul.mubr.msk.f32.gmra.mrb[2].mxu1 %vm74_vm0, %v207_v60 }
 0x181   :  { %1134 = vmatprep.mubr.msk.f32.mxu1 %vm74_vm0, %v208_v62 }
 0x184   :  { %1135 = vmatmul.mubr.msk.f32.gmra.mrb[4].mxu1 %vm74_vm0, %v209_v0 }
 0x185   :  { %1137 = vmatprep.mubr.msk.f32.mxu1 %vm74_vm0, %v210_v2 }
 0x188   :  { %1138 = vmatmul.mubr.msk.f32.gmra.mrb[6].mxu1 %vm74_vm0, %v211_v3 }
 0x24f   :  { %v1130_v6 = vpop.f32.mrb[0].mxu1 }
 0x250   :  { %v356_v7 = vadd.f32 %v1130_v6, %v213_v4  ;;  %v350_v8 = vpop.f32.mrb[1].mxu1 }
 0x251   :  { %v351_v9 = vadd.f32 %v350_v8, %v212_v5 }
 0x252   :  { %v393_v10 = vsel %vm389_vm2, %v356_v7, -inf }
 0x253   :  { %394 = vmax.xlane.f32.xlu1 %v393_v10  ;;  %v1133_v12 = vpop.f32.mrb[2].mxu1  ;;  %v390_v13 = vsel %vm389_vm2, %v351_v9, -inf }
 0x254   :  { %v360_v15 = vpop.f32.mrb[3].mxu1  ;;  %391 = vmax.xlane.f32.xlu0 %v390_v13  ;;  %v366_v19 = vadd.f32 %v1133_v12, %v215_v14 }
 0x255   :  { %v361_v16 = vadd.f32 %v360_v15, %v214_v11 }
 0x256   :  { %v399_v32 = vsel %vm389_vm2, %v366_v19, -inf }
 0x257   :  { %v1136_v21 = vpop.f32.mrb[4].mxu1  ;;  %v396_v22 = vsel %vm389_vm2, %v361_v16, -inf }
 0x258   :  { %v370_v24 = vpop.f32.mrb[5].mxu1  ;;  %397 = vmax.xlane.f32.xlu0 %v396_v22  ;;  %v376_v28 = vadd.f32 %v1136_v21, %v217_v23 }
 0x259   :  { %v371_v25 = vadd.f32 %v370_v24, %v216_v17 }
 0x25a   :  { %v405_v39 = vsel %vm389_vm2, %v376_v28, -inf }
 0x25b   :  { %v1139_v29 = vpop.f32.mrb[6].mxu1  ;;  %v402_v30 = vsel %vm389_vm2, %v371_v25, -inf }
 0x25c   :  { %v380_v34 = vpop.f32.mrb[7].mxu1  ;;  %403 = vmax.xlane.f32.xlu1 %v402_v30  ;;  %400 = vmax.xlane.f32.xlu0 %v399_v32  ;;  %v386_v37 = vadd.f32 %v1139_v29, %v219_v33 }
 0x25d   :  { %v381_v35 = vadd.f32 %v380_v34, %v218_v27 }
 0x25e   :  { %v411_v40 = vsel %vm389_vm2, %v386_v37, -inf }
 0x25f   :  { %v408_v38 = vsel %vm389_vm2, %v381_v35, -inf }
 0x260   :  { %409 = vmax.xlane.f32.xlu1 %v408_v38  ;;  %406 = vmax.xlane.f32.xlu0 %v405_v39 }
 0x264   :  { %412 = vmax.xlane.f32.xlu0 %v411_v40 }
 0x271   :  { %1331 = vrot.lane.b32.xlu1 %v1537_v20, %s1411_s25 }
 0x2e0   :  { %v395_v41 = vpop.xlane.xlu1 %394 }
 0x2e1   :  { %v415_v42 = vsub.f32 %v356_v7, %v395_v41  ;;  %v392_v43 = vpop.xlane.xlu0 %391 }
 0x2e2   :  { %v414_v44 = vsub.f32 %v351_v9, %v392_v43 }
 0x2e3   :  { %v424_v45 = vmul.f32 1.442695, %v415_v42 }
 0x2e4   :  { %v422_v46 = vmul.f32 1.442695, %v414_v44 }
 0x2e5   :  { %1350 = vpow2.f32 %v424_v45  ;;  %v398_v47 = vpop.xlane.xlu0 %397 }
 0x2e6   :  { %1352 = vpow2.f32 %v422_v46  ;;  %v416_v48 = vsub.f32 %v361_v16, %v398_v47 }
 0x2e8   :  { %v426_v49 = vmul.f32 1.442695, %v416_v48 }
 0x2e9   :  { %v404_v50 = vpop.xlane.xlu1 %403  ;;  %v401_v51 = vpop.xlane.xlu0 %400 }
 0x2ea   :  { %1354 = vpow2.f32 %v426_v49  ;;  %v418_v52 = vsub.f32 %v371_v25, %v404_v50  ;;  %v417_v53 = vsub.f32 %v366_v19, %v401_v51 }
 0x2ec   :  { %v430_v56 = vmul.f32 1.442695, %v418_v52  ;;  %v428_v58 = vmul.f32 1.442695, %v417_v53 }
 0x2ed   :  { %v410_v60 = vpop.xlane.xlu1 %409  ;;  %v407_v20 = vpop.xlane.xlu0 %406 }
 0x2ee   :  { %1356 = vpow2.f32 %v430_v56  ;;  %v419_v62 = vsub.f32 %v376_v28, %v407_v20  ;;  %v420_v5 = vsub.f32 %v381_v35, %v410_v60 }
 0x2ef   :  { %v1656_v0 = vpop.eup %1350  ;;  %1358 = vpow2.f32 %v428_v58 }
 0x2f0   :  { %v1353_v2 = vpop.eup %1352  ;;  %v432_v3 = vmul.f32 1.442695, %v419_v62  ;;  %v441_v4 = vsel %vm389_vm2, %v1656_v0, 0.0  ;;  %v434_v15 = vmul.f32 1.442695, %v420_v5 }
 0x2f1   :  { %v1332_v6 = vpop.permute.xlu1 %1331  ;;  %442 = vadd.xlane.f32.xlu0 %v441_v4  ;;  %v413_v7 = vpop.xlane.xlu0 %412  ;;  %v438_v8 = vsel %vm389_vm2, %v1353_v2, 0.0 }
 0x2f2   :  { %v1334_v9 = vunpack.i.h.bf16 %v1332_v6  ;;  %v1333_v10 = vunpack.i.l.bf16 %v1332_v6  ;;  %v421_v11 = vsub.f32 %v386_v37, %v413_v7  ;;  %439 = vadd.xlane.f32.xlu1 %v438_v8  ;;  %1360 = vpow2.f32 %v432_v3  ;;  %v639_v7 = vld [vmem:[%s1798_s4] sm:$0xff] }
 0x2f4   :  { %v1661_v12 = vpop.eup %1354  ;;  %v1249_v13 = vpack.c.bf16 %v1334_v9, %v1333_v10  ;;  %v436_v14 = vmul.f32 1.442695, %v421_v11 }
 0x2f5   :  { %v444_v16 = vsel %vm389_vm2, %v1661_v12, 0.0 }
 0x2f6   :  { %1362 = vpow2.f32 %v436_v14  ;;  %1250 = vmatprep.subr.bf16.mxu0 %v1249_v13  ;;  %445 = vadd.xlane.f32.xlu1 %v444_v16 }
 0x2f7   :  { %1252 = vmatpush3.bf16.msra.mxu0 %v1249_v13  ;;  %1364 = vpow2.f32 %v434_v15 }
 0x2f8   :  { %v1665_v17 = vpop.eup %1356 }
 0x2f9   :  { %v1667_v19 = vpop.eup %1358  ;;  %v450_v21 = vsel %vm389_vm2, %v1665_v17, 0.0 }
 0x2fa   :  { %451 = vadd.xlane.f32.xlu1 %v450_v21  ;;  %v447_v22 = vsel %vm389_vm2, %v1667_v19, 0.0 }
 0x2fb   :  { %448 = vadd.xlane.f32.xlu0 %v447_v22 }
 0x2fc   :  { %v1673_v23 = vpop.eup %1360 }
 0x2fd   :  { %v453_v24 = vsel %vm389_vm2, %v1673_v23, 0.0 }
 0x2ff   :  { %454 = vadd.xlane.f32.xlu0 %v453_v24 }
 0x300   :  { %v1677_v25 = vpop.eup %1362 }
 0x301   :  { %v459_v27 = vsel %vm389_vm2, %v1677_v25, 0.0  ;;  %v1365_v28 = vpop.eup %1364 }
 0x302   :  { %v456_v29 = vsel %vm389_vm2, %v1365_v28, 0.0 }
 0x303   :  { %460 = vadd.xlane.f32.xlu0 %v459_v27 }
 0x307   :  { %457 = vadd.xlane.f32.xlu0 %v456_v29  ;;  %v640_v29 = vld [vmem:[%s1798_s4 + $0x8] sm:$0xff] }
 0x30b   :  { %1341 = vrot.lane.b32.xlu1 %v1545_v31, %s1411_s25 }
 0x30f   :  { %1346 = vrot.lane.b32.xlu1 %v1548_v36, %s1411_s25 }
 0x31d   :  { %1336 = vrot.lane.b32.xlu0 %v1542_v26, %s1411_s25 }
 0x37e   :  { %v443_v32 = vpop.xlane.xlu0 %442 }
 0x37f   :  { %v440_v30 = vpop.xlane.xlu1 %439 }
 0x380   :  { %1366 = vrcp.f32 %v440_v30  ;;  %v816_v30 = vld [vmem:[%s1803_s9] sm:$0xff] }
 0x381   :  { %1368 = vrcp.f32 %v443_v32  ;;  %v817_v32 = vld [vmem:[%s1803_s9 + $0x8] sm:$0xff] }
 0x383   :  { %v446_v33 = vpop.xlane.xlu1 %445 }
 0x384   :  { %1370 = vrcp.f32 %v446_v33  ;;  %v818_v33 = vld [vmem:[%s1803_s9 + $0x10] sm:$0xff] }
 0x387   :  { %v452_v39 = vpop.xlane.xlu1 %451 }
 0x388   :  { %v449_v34 = vpop.xlane.xlu0 %448 }
 0x389   :  { %1372 = vrcp.f32 %v449_v34  ;;  %v1289_v34 = vpack.c.bf16 %v817_v32, %v816_v30 }
 0x38a   :  { %v1367_v35 = vpop.eup %1366  ;;  %1374 = vrcp.f32 %v452_v39  ;;  %v821_v39 = vld [vmem:[%s1803_s9 + $0x28] sm:$0xff] }
 0x38b   :  { %v463_v37 = vmul.f32 %v1367_v35, %v1353_v2  ;;  %v1342_v41 = vpop.permute.xlu1 %1341  ;;  %v1369_v51 = vpop.eup %1368  ;;  %v819_v35 = vld [vmem:[%s1803_s9 + $0x18] sm:$0xff]  ;;  %1290 = vmatprep.subr.bf16.mxu1 %v1289_v34 }
 0x38c   :  { %v455_v38 = vpop.xlane.xlu0 %454  ;;  %v1344_v43 = vunpack.i.h.bf16 %v1342_v41  ;;  %v1343_v36 = vunpack.i.l.bf16 %v1342_v41  ;;  %v465_v53 = vmul.f32 %v1369_v51, %v1656_v0  ;;  %1292 = vmatpush3.bf16.msra.mxu1 %v1289_v34  ;;  %v1017_v51 = vld [vmem:[%s1804_s10] ss:$0 sm:$0xff] }
 0x38d   :  { %1156 = vmatprep.mubr.msk.f32.mxu0 %vm389_vm2, %v463_v37  ;;  %1376 = vrcp.f32 %v455_v38  ;;  %v1293_v37 = vpack.c.bf16 %v819_v35, %v818_v33  ;;  %v820_v38 = vld [vmem:[%s1803_s9 + $0x20] sm:$0xff] }
 0x38e   :  { %v1257_v47 = vpack.c.bf16 %v1344_v43, %v1343_v36  ;;  %v1371_v52 = vpop.eup %1370  ;;  %v823_v43 = vld [vmem:[%s1803_s9 + $0x38] sm:$0xff] }
 0x38f   :  { %v1347_v26 = vpop.permute.xlu1 %1346  ;;  %v467_v58 = vmul.f32 %v1371_v52, %v1661_v12  ;;  %1294 = vmatprep.subr.bf16.mxu1 %v1293_v37  ;;  %v45_v52 = vld [vmem:[%s1794_s0] sm:$0xff] }
 0x390   :  { %v461_v40 = vpop.xlane.xlu0 %460  ;;  %v1349_v48 = vunpack.i.h.bf16 %v1347_v26  ;;  %v1348_v49 = vunpack.i.l.bf16 %v1347_v26  ;;  %1296 = vmatpush3.bf16.msra.mxu1 %v1293_v37 }
 0x392   :  { %v1261_v50 = vpack.c.bf16 %v1349_v48, %v1348_v49 }
 0x393   :  { %v1373_v56 = vpop.eup %1372 }
 0x394   :  { %v458_v31 = vpop.xlane.xlu0 %457  ;;  %v1375_v60 = vpop.eup %1374  ;;  %v469_v20 = vmul.f32 %v1373_v56, %v1667_v19 }
 0x395   :  { %1378 = vrcp.f32 %v458_v31  ;;  %v471_v2 = vmul.f32 %v1375_v60, %v1665_v17 }
 0x396   :  { %1380 = vrcp.f32 %v461_v40  ;;  %v1297_v40 = vpack.c.bf16 %v821_v39, %v820_v38 }
 0x397   :  { %v1377_v62 = vpop.eup %1376 }
 0x398   :  { %v1337_v42 = vpop.permute.xlu0 %1336  ;;  %v473_v0 = vmul.f32 %v1377_v62, %v1673_v23  ;;  %1298 = vmatprep.subr.bf16.mxu1 %v1297_v40 }
 0x399   :  { %v1339_v44 = vunpack.i.h.bf16 %v1337_v42  ;;  %v1338_v45 = vunpack.i.l.bf16 %v1337_v42  ;;  %1300 = vmatpush3.bf16.msra.mxu1 %v1297_v40  ;;  %v822_v42 = vld [vmem:[%s1803_s9 + $0x30] sm:$0xff] }
 0x39a   :  { %v1301_v36 = vpack.c.bf16 %v823_v43, %v822_v42 }
 0x39b   :  { %v1253_v46 = vpack.c.bf16 %v1339_v44, %v1338_v45  ;;  %v1014_v44 = vld [vmem:[%s1802_s8] ss:$0 sm:$0xff] }
 0x39c   :  { %1302 = vmatprep.subr.bf16.mxu1 %v1301_v36 }
 0x39d   :  { %1254 = vmatprep.subr.bf16.mxu0 %v1253_v46  ;;  %1304 = vmatpush3.bf16.msra.mxu1 %v1301_v36 }
 0x39e   :  { %1256 = vmatpush3.bf16.msra.mxu0 %v1253_v46 }
 0x39f   :  { %1258 = vmatprep.subr.bf16.mxu0 %v1257_v47  ;;  %v1379_v3 = vpop.eup %1378 }
 0x3a0   :  { %v1381_v4 = vpop.eup %1380  ;;  %v475_v5 = vmul.f32 %v1379_v3, %v1365_v28  ;;  %v724_v28 = vld [vmem:[%s1801_s7 + $0x10] sm:$0xff] }
 0x3a1   :  { %v477_v6 = vmul.f32 %v1381_v4, %v1677_v25 }
 0x3a2   :  { %1260 = vmatpush3.bf16.msra.mxu0 %v1257_v47 }
 0x3a3   :  { %1262 = vmatprep.subr.bf16.mxu0 %v1261_v50 }
 0x3a6   :  { %1264 = vmatpush3.bf16.msra.mxu0 %v1261_v50  ;;  %v46_v50 = vld [vmem:[%s1794_s0 + $0x8] sm:$0xff] }
 0x3a9   :  { %1157 = vmatmul.mubr.msk.f32.vlgmr.msra.gmra.mrb[8].mxu0 %vm389_vm2, %v465_v53 }
 0x3aa   :  { %1159 = vmatprep.mubr.msk.f32.mxu0 %vm389_vm2, %v467_v58 }
 0x3ad   :  { %1160 = vmatmul.mubr.msk.f32.gmra.mrb[10].mxu0 %vm389_vm2, %v469_v20 }
 0x3ae   :  { %1162 = vmatprep.mubr.msk.f32.mxu0 %vm389_vm2, %v471_v2 }
 0x3b1   :  { %1163 = vmatmul.mubr.msk.f32.gmra.mrb[12].mxu0 %vm389_vm2, %v473_v0 }
 0x3b2   :  { %1165 = vmatprep.mubr.msk.f32.mxu0 %vm389_vm2, %v475_v5 }
 0x3b5   :  { %1166 = vmatmul.mubr.msk.f32.gmra.mrb[14].mxu0 %vm389_vm2, %v477_v6 }
 0x3b6   :  { %1184 = vmatprep.mubr.msk.f32.mxu0 %vm389_vm2, %v639_v7 }
 0x47c   :  { %v1158_v8 = vpop.f32.mrb[8].mxu0 }
 0x47d   :  { %v632_v9 = vmul.f32 %v1158_v8, %v1576_v54  ;;  %v592_v10 = vpop.f32.mrb[9].mxu0 }
 0x47e   :  { %v631_v11 = vmul.f32 %v592_v10, %v1535_v18 }
 0x480   :  { %v1265_v12 = vpack.c.bf16 %v632_v9, %v631_v11  ;;  %v1161_v13 = vpop.f32.mrb[10].mxu0 }
 0x481   :  { %v634_v14 = vmul.f32 %v1161_v13, %v1587_v57  ;;  %v602_v15 = vpop.f32.mrb[11].mxu0  ;;  %v723_v57 = vld [vmem:[%s1801_s7 + $0x8] sm:$0xff] }
 0x482   :  { %v633_v16 = vmul.f32 %v602_v15, %v1581_v55  ;;  %1266 = vmatprep.subr.bf16.mxu0 %v1265_v12  ;;  %v722_v55 = vld [vmem:[%s1801_s7] sm:$0xff] }
 0x483   :  { %1268 = vmatpush3.bf16.msra.mxu0 %v1265_v12  ;;  %v1281_v27 = vpack.c.bf16 %v723_v57, %v722_v55  ;;  %v1021_v55 = vld [vmem:[%s1806_s12] ss:$0 sm:$0xff] }
 0x484   :  { %v1269_v17 = vpack.c.bf16 %v634_v14, %v633_v16  ;;  %v1164_v19 = vpop.f32.mrb[12].mxu0 }
 0x485   :  { %v636_v21 = vmul.f32 %v1164_v19, %v1601_v61  ;;  %v612_v22 = vpop.f32.mrb[13].mxu0 }
 0x486   :  { %v635_v23 = vmul.f32 %v612_v22, %v1593_v59  ;;  %1270 = vmatprep.subr.bf16.mxu0 %v1269_v17 }
 0x487   :  { %1272 = vmatpush3.bf16.msra.mxu0 %v1269_v17 }
 0x488   :  { %v1273_v54 = vpack.c.bf16 %v636_v21, %v635_v23  ;;  %v1167_v18 = vpop.f32.mrb[14].mxu0 }
 0x489   :  { %v638_v24 = vmul.f32 %v1167_v18, %v1615_v1  ;;  %v622_v25 = vpop.f32.mrb[15].mxu0  ;;  %v725_v1 = vld [vmem:[%s1801_s7 + $0x18] sm:$0xff] }
 0x48a   :  { %v637_v61 = vmul.f32 %v622_v25, %v1607_v63  ;;  %1274 = vmatprep.subr.bf16.mxu0 %v1273_v54  ;;  %v1285_v63 = vpack.c.bf16 %v725_v1, %v724_v28 }
 0x48b   :  { %1276 = vmatpush3.bf16.msra.mxu0 %v1273_v54  ;;  %v1020_v54 = vld [vmem:[%s1805_s11] ss:$0 sm:$0xff] }
 0x48c   :  { %v1277_v59 = vpack.c.bf16 %v638_v24, %v637_v61 }
 0x48e   :  { %1278 = vmatprep.subr.bf16.mxu0 %v1277_v59 }
 0x48f   :  { %1280 = vmatpush3.bf16.msra.mxu0 %v1277_v59 }
 0x490   :  { %1282 = vmatprep.subr.bf16.mxu0 %v1281_v27 }
 0x492   :  { %1185 = vmatmul.mubr.msk.f32.vlgmr.msra.gmra.mrb[16].mxu0 %vm389_vm2, %v640_v29 }
 0x493   :  { %1284 = vmatpush3.bf16.msra.mxu0 %v1281_v27 }
 0x494   :  { %1286 = vmatprep.subr.bf16.mxu0 %v1285_v63 }
 0x497   :  { %1288 = vmatpush3.bf16.msra.mxu0 %v1285_v63 }
 0x565   :  { %v1186_v41 = vpop.f32.mrb[16].mxu0 }
 0x566   :  { %v713_v31 = vpop.f32.mrb[17].mxu0  ;;  %v913_v56 = vadd.f32 %v1186_v41, %v46_v50 }
 0x567   :  { %1195 = vmatprep.mubr.msk.f32.mxu0 %vm74_vm0, %v713_v31  ;;  %v912_v20 = vadd.f32 %v713_v31, %v45_v52 }
 0x568   :  { %1196 = vmatmul.mubr.msk.f32.vlgmr.msra.gmra.mrb[18].mxu0 %vm74_vm0, %v1186_v41 }
 0x63b   :  { %v1197_v45 = vpop.f32.mrb[18].mxu0 }
 0x63c   :  { %v811_v26 = vadd.f32 %v1197_v45, %v1014_v44  ;;  %v805_v46 = vpop.f32.mrb[19].mxu0 }
 0x63d   :  { %v806_v47 = vadd.f32 %v1014_v44, %v805_v46 }
 0x63e   :  { %v815_v49 = vmax.f32 %v811_v26, 0.0 }
 0x63f   :  { %v814_v48 = vmax.f32 %v806_v47, 0.0 }
 0x641   :  { %1214 = vmatprep.mubr.msk.f32.mxu1 %vm389_vm2, %v814_v48 }
 0x642   :  { %1215 = vmatmul.mubr.msk.f32.vlgmr.msra.gmra.mrb[8].mxu1 %vm389_vm2, %v815_v49 }
 0x715   :  { %v1216_v53 = vpop.f32.mrb[8].mxu1 }
 0x716   :  { %v909_v58 = vadd.f32 %v1216_v53, %v1017_v51  ;;  %v903_v60 = vpop.f32.mrb[9].mxu1 }
 0x717   :  { %v904_v62 = vadd.f32 %v1017_v51, %v903_v60 }
 0x718   :  { %v915_v2 = vadd.f32 %v913_v56, %v909_v58 }
 0x719   :  { %v914_v3 = vadd.f32 %v912_v20, %v904_v62 }
 0x71a   :  { %v919_v0 = vsel %vm74_vm0, %v915_v2, 0.0 }
 0x71b   :  { %920 = vadd.xlane.f32.xlu0 %v919_v0  ;;  %v916_v4 = vsel %vm74_vm0, %v914_v3, 0.0 }
 0x71c   :  { %917 = vadd.xlane.f32.xlu1 %v916_v4 }
 0x7a8   :  { %v921_v5 = vpop.xlane.xlu0 %920 }
 0x7a9   :  { %v924_v6 = vmul.f32 0.03125, %v921_v5  ;;  %v918_v7 = vpop.xlane.xlu1 %917 }
 0x7aa   :  { %v923_v8 = vmul.f32 0.03125, %v918_v7 }
 0x7ab   :  { %v926_v9 = vsub.f32 %v915_v2, %v924_v6 }
 0x7ac   :  { %v925_v10 = vsub.f32 %v914_v3, %v923_v8 }
 0x7ad   :  { %v928_v11 = vmul.f32 %v926_v9, %v926_v9 }
 0x7ae   :  { %v927_v12 = vmul.f32 %v925_v10, %v925_v10 }
 0x7af   :  { %v932_v13 = vsel %vm74_vm0, %v928_v11, 0.0 }
 0x7b0   :  { %933 = vadd.xlane.f32.xlu0 %v932_v13  ;;  %v929_v14 = vsel %vm74_vm0, %v927_v12, 0.0 }
 0x7b1   :  { %930 = vadd.xlane.f32.xlu1 %v929_v14 }
 0x83d   :  { %v934_v15 = vpop.xlane.xlu0 %933 }
 0x83e   :  { %v936_v16 = vmul.f32 0.03125, %v934_v15  ;;  %v931_v17 = vpop.xlane.xlu1 %930 }
 0x83f   :  { %v935_v19 = vmul.f32 0.03125, %v931_v17 }
 0x840   :  { %v938_v21 = vadd.f32 1e-05, %v936_v16 }
 0x841   :  { %v937_v22 = vadd.f32 1e-05, %v935_v19 }
 0x842   :  { %1382 = vrsqrt.f32 %v938_v21 }
 0x843   :  { %1384 = vrsqrt.f32 %v937_v22 }
 0x84c   :  { %v1383_v23 = vpop.eup %1382 }
 0x84d   :  { %v1385_v18 = vpop.eup %1384  ;;  %v942_v24 = vmul.f32 %v1383_v23, %v926_v9 }
 0x84e   :  { %v941_v25 = vmul.f32 %v1385_v18, %v925_v10 }
 0x84f   :  { %v951_v57 = vmul.f32 %v1020_v54, %v942_v24 }
 0x850   :  { %v950_v61 = vmul.f32 %v1020_v54, %v941_v25 }
 0x851   :  { %v960_v59 = vadd.f32 %v1021_v55, %v951_v57 }
 0x852   :  { %v959_v27 = vadd.f32 %v1021_v55, %v950_v61 }
 0x853   :  { %962 = vst.msk [vmem:[#allocation2 + $0x8] sm:$0xff] %vm74_vm0, %v960_v59 }
 0x854   :  { %961 = vst.msk [vmem:[#allocation2] sm:$0xff] %vm74_vm0, %v959_v27 }
 0x855   :  { %1397 = shalt.err (!%p1394_p4)
}
 0x856   :  { %s1398_s20 = scalar_lea.hbm %s1807_s13, 256 }
 0x857   :  { %p1399_p5 = scmp.ne.s32.totalorder %s1807_s13, %s1398_s20  ;;  %p1402_p6 = scmp.lt.u32.totalorder %s1398_s20, %s1807_s13 }
 0x859   :  { %p1404_p7 = pnand %p1402_p6, %p1399_p5 }
 0x85b   :  { %1407 = shalt.err (!%p1404_p7)
}
 0x85c   :  { %s1413_s22 = smov 128   ;;  %s1414_s23 = smov 8  }
 0x85d   :  { %974 = dma.vmem_to_hbm [thread:$0]  %s969_s18, 256, %s1807_s13, [#allocation3], %s1413_s22, %s1413_s22, %s1414_s23  }
 0x85e   :  { %1408 = dma.done.wait [#allocation3], 256  }
 0x85f   :  { %1409 = vsyncadd [#allocation3], 4294967040 }
 0x860   :  { %978 = vsyncpa [#allocation3], 1 }

</bundles_post_ra>
